<compile_context>
chip_gen: v5e
topology: v5e:2x2
jax: 0.10.0
libtpu: 0.0.40
codegen_flags: <defaults>
</compile_context>

<pallas_src>
import jax
import jax.numpy as jnp
from jax.experimental import pallas as pl
from jax.experimental.pallas import tpu as pltpu

CLS_ID = 101
SEP_ID = 102
PAD_ID = 0

_LANE = 128
_MAX_BATCH_TILE = 4096   # ~7 MiB double-buffered in+out at 128 int32 lanes -> fits v5e scoped VMEM
_SMALL_BATCH = 128       # below this, fused XLA beats the custom-call launch cost


def _tokenize_pad_kernel(len_ref, raw_ref, out_ref):
    """One batch tile: emit [CLS] t0..t(n-1) [SEP] [PAD]... rows.

    len_ref : (TB, 1)  int   -- per-row raw length (clamped in here)
    raw_ref : (TB, RW) int   -- raw wordpiece ids, token j in column j
                                (RW >= max_length, RW a multiple of 128)
    out_ref : (TB, ML) int32
    """
    TB, ML = out_ref.shape
    # truncation to max_length-2 body tokens + clamp negative lengths to 0
    n = jnp.clip(len_ref[...].astype(jnp.int32), 0, ML - 2)             # (TB, 1)
    raw = raw_ref[...].astype(jnp.int32)                                 # (TB, RW); int8/16 upcast here
    # shift token j from column j to column j+1 (lane-aligned XLU rotate), then
    # trim to the output width. Column 0 holds rolled-around junk; it is
    # overwritten with [CLS] by the 1-lane store below, keeping the VALU select
    # chain at 2 compares + 2 selects.
    shifted = pltpu.roll(raw, shift=1, axis=1)[:, :ML]                   # (TB, ML)
    pos = jax.lax.broadcasted_iota(jnp.int32, (TB, ML), 1)
    out_ref[...] = jnp.where(
        pos <= n, shifted,
        jnp.where(pos == n + 1, jnp.int32(SEP_ID), jnp.int32(PAD_ID)))
    out_ref[:, 0:1] = jnp.full((TB, 1), CLS_ID, jnp.int32)               # [CLS] column


def _tokenize_pad_xla(raw_ids, lengths, max_length):
    """Small-batch path: identical numerics, fused by XLA (no custom-call launch)."""
    B, R = raw_ids.shape
    ML = max_length
    n = jnp.clip(lengths.astype(jnp.int32), 0, min(ML - 2, R)).reshape(B, 1)
    ncopy = min(R, ML - 1)
    body = jnp.pad(raw_ids[:, :ncopy].astype(jnp.int32), ((0, 0), (1, ML - 1 - ncopy)))
    pos = jax.lax.broadcasted_iota(jnp.int32, (B, ML), 1)
    return jnp.where(pos == 0, jnp.int32(CLS_ID),
                     jnp.where(pos <= n, body,
                               jnp.where(pos == n + 1, jnp.int32(SEP_ID),
                                         jnp.int32(PAD_ID))))


def bert_tokenize_pad(raw_ids, lengths, max_length=77, *, batch_tile=None,
                      force_pallas=False):
    """Numeric half of BERTTokenizer.forward (post string->wordpiece lookup).

    raw_ids : (B, R) int{8,16,32} wordpiece ids, token j in column j
    lengths : (B,)   int          number of valid raw tokens per row
    returns : (B, max_length) int32
    """
    B, R = raw_ids.shape
    ML = int(max_length)
    if ML < 2:
        raise ValueError("max_length must be >= 2 ([CLS] + [SEP])")

    if not force_pallas and B < _SMALL_BATCH:
        return _tokenize_pad_xla(raw_ids, lengths, ML)

    # Raw window read by the kernel: lane-aligned and >= max_length wide.
    RW = pl.cdiv(ML, _LANE) * _LANE
    if R >= RW:
        raw_in = raw_ids          # no staging copy; the BlockSpec reads cols [0, RW) only
    else:
        # Uncommon: raw buffer narrower than one lane tile. One small pad keeps the
        # in-kernel roll lane-aligned (cost: a single B x RW pass on a tiny array).
        raw_in = jnp.pad(raw_ids, ((0, 0), (0, RW - R)))

    lens_in = lengths
    if R < ML - 2:
        # a claimed length can never exceed the raw buffer that actually exists
        lens_in = jnp.minimum(lens_in, R)
    lens_in = lens_in.reshape(B, 1)   # metadata-only

    # Batch tile: >=2 grid steps so both v7x TensorCores get work, capped at 4096
    # rows for v5e's 16 MiB scoped-VMEM default; multiple of 32 rows so int8/int16
    # raw ids keep a legal sublane tiling.
    if batch_tile is None:
        tb = -(-B // 2)
        tb = -(-tb // 32) * 32
        tb = min(tb, _MAX_BATCH_TILE)
    else:
        tb = max(32, -(-int(batch_tile) // 32) * 32)
    TB = B if tb >= B else tb
    grid = (pl.cdiv(B, TB),)

    return pl.pallas_call(
        _tokenize_pad_kernel,
        out_shape=jax.ShapeDtypeStruct((B, ML), jnp.int32),
        grid=grid,
        in_specs=[
            pl.BlockSpec((TB, 1), lambda i: (i, 0)),
            pl.BlockSpec((TB, RW), lambda i: (i, 0)),
        ],
        out_specs=pl.BlockSpec((TB, ML), lambda i: (i, 0)),
        compiler_params=pltpu.CompilerParams(
            dimension_semantics=("parallel",)),
    )(lens_in, raw_in)


def bert_tokenizer_encode(raw_ids, lengths, max_length=77, vq_interface=True, **kw):
    """Mirrors BERTTokenizer.encode's return structure."""
    tokens = bert_tokenize_pad(raw_ids, lengths, max_length=max_length, **kw)
    if not vq_interface:
        return tokens
    return (None, None, [None, None, tokens])


if __name__ == "__main__":
    import numpy as np

    key = jax.random.PRNGKey(0)
    MAX_LEN = 77
    RAW_LEN = 128   # pre-tokenized buffer width (> max_length: exercises truncation)

    def ref_tokens(ids, lens, L):
        ids = np.asarray(ids)
        lens = np.asarray(lens)
        out = np.full((ids.shape[0], L), PAD_ID, np.int32)
        for b in range(ids.shape[0]):
            n = int(np.clip(lens[b], 0, min(L - 2, ids.shape[1])))
            out[b, 0] = CLS_ID
            out[b, 1:1 + n] = ids[b, :n].astype(np.int32)
            out[b, 1 + n] = SEP_ID
        return out

    k1, k2, k3 = jax.random.split(key, 3)

    # Case 1: module-sized tiny batch (B=2) -> XLA fast path (pad + truncate rows).
    raw_small = jax.random.randint(k1, (2, RAW_LEN), 1000, 30000, dtype=jnp.int32)
    len_small = jnp.array([5, 120], dtype=jnp.int32)
    tok_small = jax.block_until_ready(bert_tokenize_pad(raw_small, len_small, MAX_LEN))
    assert tok_small.shape == (2, MAX_LEN) and tok_small.dtype == jnp.int32
    np.testing.assert_array_equal(np.asarray(tok_small),
                                  ref_tokens(raw_small, len_small, MAX_LEN))

    # Case 2: Pallas path with a batch that is NOT a multiple of the tile
    # (exercises the partial last block) and lengths spanning negative / zero /
    # longer-than-max_length values.
    B = 200
    raw_big = jax.random.randint(k2, (B, RAW_LEN), 1000, 30000, dtype=jnp.int32)
    len_big = jax.random.randint(k3, (B,), -3, RAW_LEN, dtype=jnp.int32)
    tok_big = jax.block_until_ready(
        bert_tokenize_pad(raw_big, len_big, MAX_LEN, batch_tile=128, force_pallas=True))
    assert tok_big.shape == (B, MAX_LEN) and tok_big.dtype == jnp.int32
    np.testing.assert_array_equal(np.asarray(tok_big),
                                  ref_tokens(raw_big, len_big, MAX_LEN))

    # encode()'s vq_interface return structure
    _, _, (_, _, tok3) = bert_tokenizer_encode(raw_big, len_big, max_length=MAX_LEN,
                                               batch_tile=128, force_pallas=True)
    jax.block_until_ready(tok3)

    print("KERNEL_OK")
</pallas_src>

<mosaic_0001>
module attributes {stable_mosaic.version = 11 : i64} {
  func.func @_tokenize_pad_kernel(%arg0: i32, %arg1: memref<128x1xi32, #tpu.memory_space<vmem>>, %arg2: memref<128x128xi32, #tpu.memory_space<vmem>>, %arg3: memref<128x77xi32, #tpu.memory_space<vmem>>) attributes {dimension_semantics = [#tpu.dimension_semantics<parallel>], iteration_bounds = array<i64: 2>, scalar_prefetch = 0 : i64, scratch_operands = 0 : i64, tpu.core_type = #tpu.core_type<tc>, window_params = [{transform_indices = @transform_0, window_bounds = array<i64: 128, 1>}, {transform_indices = @transform_1, window_bounds = array<i64: 128, 128>}, {transform_indices = @transform_2, window_bounds = array<i64: 128, 77>}]} {
    %c0 = arith.constant 0 : index
    %c0_0 = arith.constant 0 : index
    %0 = vector.load %arg1[%c0, %c0_0] : memref<128x1xi32, #tpu.memory_space<vmem>>, vector<128x1xi32>
    %c0_i32 = arith.constant 0 : i32
    %c75_i32 = arith.constant 75 : i32
    %1 = vector.broadcast %c0_i32 : i32 to vector<128x1xi32>
    %2 = arith.maxsi %1, %0 : vector<128x1xi32>
    %3 = vector.broadcast %c75_i32 : i32 to vector<128x1xi32>
    %4 = arith.minsi %3, %2 : vector<128x1xi32>
    %c0_1 = arith.constant 0 : index
    %c0_2 = arith.constant 0 : index
    %5 = vector.load %arg2[%c0_1, %c0_2] : memref<128x128xi32, #tpu.memory_space<vmem>>, vector<128x128xi32>
    %c1_i32 = arith.constant 1 : i32
    %6 = tpu.dynamic_rotate %5 by %c1_i32 dim 1 : vector<128x128xi32>, i32 -> vector<128x128xi32>
    %7 = vector.extract_strided_slice %6 {offsets = [0, 0], sizes = [128, 77], strides = [1, 1]} : vector<128x128xi32> to vector<128x77xi32>
    %8 = tpu.iota {dimensions = array<i32: 1>} : vector<128x77xi32>
    %9 = vector.broadcast %4 : vector<128x1xi32> to vector<128x77xi32>
    %10 = arith.cmpi sle, %8, %9 : vector<128x77xi32>
    %c1_i32_3 = arith.constant 1 : i32
    %11 = vector.broadcast %c1_i32_3 : i32 to vector<128x1xi32>
    %12 = arith.addi %4, %11 : vector<128x1xi32>
    %13 = vector.broadcast %12 : vector<128x1xi32> to vector<128x77xi32>
    %14 = arith.cmpi eq, %8, %13 : vector<128x77xi32>
    %c102_i32 = arith.constant 102 : i32
    %c0_i32_4 = arith.constant 0 : i32
    %15 = vector.broadcast %c102_i32 : i32 to vector<128x77xi32>
    %16 = vector.broadcast %c0_i32_4 : i32 to vector<128x77xi32>
    %17 = arith.select %14, %15, %16 : vector<128x77xi1>, vector<128x77xi32>
    %18 = arith.select %10, %7, %17 : vector<128x77xi1>, vector<128x77xi32>
    %c0_5 = arith.constant 0 : index
    %c0_6 = arith.constant 0 : index
    %19 = vector.load %arg3[%c0_5, %c0_6] : memref<128x77xi32, #tpu.memory_space<vmem>>, vector<128x77xi32>
    tpu.vector_store %arg3[%c0_5, %c0_6], %18 {strides = array<i32>} : memref<128x77xi32, #tpu.memory_space<vmem>>, vector<128x77xi32>,
    %c101_i32 = arith.constant 101 : i32
    %20 = vector.broadcast %c101_i32 : i32 to vector<128x1xi32>
    %c0_7 = arith.constant 0 : index
    %c0_8 = arith.constant 0 : index
    %21 = vector.load %arg3[%c0_7, %c0_8] : memref<128x77xi32, #tpu.memory_space<vmem>>, vector<128x1xi32>
    tpu.vector_store %arg3[%c0_7, %c0_8], %20 {strides = array<i32>} : memref<128x77xi32, #tpu.memory_space<vmem>>, vector<128x1xi32>,
    return
  }
  func.func @transform_0(%arg0: i32) -> (i32, i32) {
    %c0_i32 = arith.constant 0 : i32
    %c0_i32_0 = arith.constant 0 : i32
    return %arg0, %c0_i32 : i32, i32
  }
  func.func @transform_1(%arg0: i32) -> (i32, i32) {
    %c0_i32 = arith.constant 0 : i32
    %c0_i32_0 = arith.constant 0 : i32
    return %arg0, %c0_i32 : i32, i32
  }
  func.func @transform_2(%arg0: i32) -> (i32, i32) {
    %c0_i32 = arith.constant 0 : i32
    %c0_i32_0 = arith.constant 0 : i32
    return %arg0, %c0_i32 : i32, i32
  }
}

</mosaic_0001>

<bundles_post_ra>
// kernel: tpu_custom_call.1
= control target key start
LH: loop header
LB: loop body
LE: loop exit
PB: predicated region body
PF: predicated region fallthrough
CT: control target
= control target key end

     0   :  { %s1064_s9 = smov 0   ;;  %s1066_s10 = smov 0   ;;  %s1494_s0 = inlined_call_operand.vmem [shape: s32[200,1], index: 0, kind: input, shape index: {}]   ;;  %s1495_s1 = inlined_call_operand.vmem [shape: s32[200,128], index: 1, kind: input, shape index: {}]   ;;  %s1496_s2 = inlined_call_operand.vmem [shape: s32[200,77], index: 2, kind: output, shape index: {}]  }
   0x1   :  { %s1068_s11 = smov 0  }
   0x2 LB: > { %s1077_s12 = sadd.s32 4294967295, %s1012_s11   ;;  %s1079_s13 = sadd.s32 1, %s1012_s11   ;;  %s1012_s11 = sphi %s1068_s11, %s1505_s11   ;;  %s1008_s10 = sphi %s1066_s10, %s1504_s10   ;;  %s1004_s9 = sphi %s1064_s9, %s1503_s9  }
   0x3   : > { %s68_s14 = ssub.s32 %s1012_s11, %s1079_s13  ;;  %s71_s15 = sadd.s32 1, %s1008_s10 }
   0x4   : > { %p69_p0 = scmp.eq.s32.totalorder %s68_s14, 0  ;;  %p81_p1 = scmp.ne.s32.totalorder %s1008_s10, %s1004_s9 }
   0x5   : > { %p82_p2 = scmp.eq.s32.totalorder %s1077_s12, 1  ;;  %p838_p3 = scmp.ge.s32.totalorder %s1012_s11, 1 }
   0x6   : > { %s1087_s16 = scalar_select %p69_p0, %s1008_s10, %s71_s15  }
   0x7   : > { %p1089_p4 = por %p82_p2, %p81_p1  ;;  %p140_p5 = scmp.lt.s32.totalorder %s1012_s11, 3 }
   0x9   : > { %p141_p6 = pnand %p838_p3, %p140_p5 }
   0xa   : > { %s1094_s18 = sshll.u32 (!%p141_p6), %s1077_s12, 4  ;;  %s1046_s24 = smov (!%p141_p6), 1  }
   0xb   : > { %144 = sbr.rel (%p141_p6) target bundleno = 311 (0x137), region = 28  ;;  %p179_p7 = scmp.lt.s32.totalorder (!%p141_p6), %s1094_s18, 24 }
   0xc   : > { %s171_s28 = sand.u32 (!%p141_p6), 1, %s1004_s9  }
   0xd   : > { %s839_s29 = sshll.u32 (!%p141_p6), %s171_s28, 7 }
   0xe   : > { %s1236_s30 = scalar_lea.vmem (!%p141_p6), [#allocation2], %s839_s29  }
  0x10   : > { %s1098_s19 = scalar_select %p179_p7, %s1094_s18, 24  ;;  %v1047_v3 = vmov 0  }
  0x11   : > { %956 = vset.pattern.permute.xlu2 %v1047_v3  ;;  %955 = vset.pattern.permute.xlu1 %v1047_v3  ;;  %s555_s3 = ssub.s32 (%p1089_p4), 25, %s1094_s18  ;;  %s861_s4 = sshll.u32 (%p1089_p4), %s1077_s12, 7 }
  0x12   : > { %s841_s20 = sshll.u32 %s1098_s19, 3  ;;  %957 = vset.pattern.permute.xlu0 %v1047_v3  ;;  %p556_p8 = scmp.lt.s32.totalorder (%p1089_p4), %s555_s3, 16 }
  0x13   : > { %s1104_s23 = scalar_lea.vmem %s1495_s1, %s841_s20  ;;  %s1132_s27 = scalar_lea.vmem %s1494_s0, %s841_s20 }
  0x14   : > { %v291_v0 = vld [vmem:[%s1104_s23 + $0x20] sm:$0xff]  ;;  %v289_v1 = vld [vmem:[%s1104_s23 + $0x10] sm:$0xff]  ;;  %v292_v4 = vld [vmem:[%s1104_s23 + $0x28] sm:$0xff]  ;;  %s1397_s7 = scalar_lea.vmem (%p1089_p4), %s1496_s2, %s861_s4  }
  0x15   : > { %v287_v2 = vld [vmem:[%s1104_s23] sm:$0xff]  ;;  %311 = vrot.lane.b32.xlu2 %v291_v0, %s1046_s24  ;;  %307 = vrot.lane.b32.xlu1 %v289_v1, %s1046_s24  ;;  %v290_v5 = vld [vmem:[%s1104_s23 + $0x18] sm:$0xff] }
  0x16   : > { %303 = vrot.lane.b32.xlu0 %v287_v2, %s1046_s24  ;;  %v288_v6 = vld [vmem:[%s1104_s23 + $0x8] sm:$0xff]  ;;  %v295_v7 = vld [vmem:[%s1104_s23 + $0x40] sm:$0xff]  ;;  %v294_v8 = vld [vmem:[%s1104_s23 + $0x38] sm:$0xff] }
  0x17   : > { %v293_v9 = vld [vmem:[%s1104_s23 + $0x30] sm:$0xff]  ;;  %v298_v10 = vld [vmem:[%s1104_s23 + $0x58] sm:$0xff]  ;;  %v296_v12 = vld [vmem:[%s1104_s23 + $0x48] sm:$0xff] }
  0x18   : > { %v297_v11 = vld [vmem:[%s1104_s23 + $0x50] sm:$0xff]  ;;  %v208_v13 = vld [vmem:[%s1132_s27 + $0x8] sm:$0xff]  ;;  %v207_v14 = vld [vmem:[%s1132_s27] sm:$0xff] }
  0x19   : > { %vm225_vm0 = vcmp.gt.s32.totalorder %v208_v13, 0  ;;  %vm223_vm1 = vcmp.gt.s32.totalorder %v207_v14, 0  ;;  %v301_v15 = vld [vmem:[%s1104_s23 + $0x70] sm:$0xff]  ;;  %v300_v16 = vld [vmem:[%s1104_s23 + $0x68] sm:$0xff]  ;;  %v299_v17 = vld [vmem:[%s1104_s23 + $0x60] sm:$0xff] }
  0x1a   : > { %v226_v18 = vsel %vm225_vm0, %v208_v13, 0  ;;  %v224_v19 = vsel %vm223_vm1, %v207_v14, 0  ;;  %v211_v20 = vld [vmem:[%s1132_s27 + $0x20] sm:$0xff]  ;;  %v210_v21 = vld [vmem:[%s1132_s27 + $0x18] sm:$0xff]  ;;  %v209_v22 = vld [vmem:[%s1132_s27 + $0x10] sm:$0xff] }
  0x1b   : > { %vm257_vm2 = vcmp.lt.s32.totalorder %v226_v18, 75  ;;  %vm255_vm3 = vcmp.lt.s32.totalorder %v224_v19, 75  ;;  %vm231_vm4 = vcmp.gt.s32.totalorder %v211_v20, 0  ;;  %vm229_vm5 = vcmp.gt.s32.totalorder %v210_v21, 0  ;;  %v302_v25 = vld [vmem:[%s1104_s23 + $0x78] sm:$0xff]  ;;  %v213_v29 = vld [vmem:[%s1132_s27 + $0x30] sm:$0xff] }
  0x1c   : > { %v1149_v23 = vsel %vm257_vm2, %v226_v18, 75  ;;  %v1151_v24 = vsel %vm255_vm3, %v224_v19, 75  ;;  %vm227_vm6 = vcmp.gt.s32.totalorder %v209_v22, 0  ;;  %v232_v26 = vsel %vm231_vm4, %v211_v20, 0  ;;  %v212_v30 = vld [vmem:[%s1132_s27 + $0x28] sm:$0xff]  ;;  %v214_v31 = vld [vmem:[%s1132_s27 + $0x38] sm:$0xff] }
  0x1d   : > { %313 = vrot.lane.b32.xlu2 %v292_v4, %s1046_s24  ;;  %309 = vrot.lane.b32.xlu1 %v290_v5, %s1046_s24  ;;  %v230_v27 = vsel %vm229_vm5, %v210_v21, 0  ;;  %v228_v28 = vsel %vm227_vm6, %v209_v22, 0  ;;  %vm263_vm7 = vcmp.lt.s32.totalorder %v232_v26, 75  ;;  %vm235_vm10 = vcmp.gt.s32.totalorder %v213_v29, 0  ;;  %v216_v38 = vld [vmem:[%s1132_s27 + $0x48] sm:$0xff]  ;;  %v215_v39 = vld [vmem:[%s1132_s27 + $0x40] sm:$0xff] }
  0x1e   : > { %305 = vrot.lane.b32.xlu0 %v288_v6, %s1046_s24  ;;  %vm261_vm8 = vcmp.lt.s32.totalorder %v230_v27, 75  ;;  %vm259_vm9 = vcmp.lt.s32.totalorder %v228_v28, 75  ;;  %vm233_vm11 = vcmp.gt.s32.totalorder %v212_v30, 0  ;;  %v1160_v32 = vsel %vm263_vm7, %v232_v26, 75  ;;  %v217_v40 = vld [vmem:[%s1132_s27 + $0x50] sm:$0xff]  ;;  %v219_v47 = vld [vmem:[%s1132_s27 + $0x60] sm:$0xff] }
  0x1f   : > { %v1162_v33 = vsel %vm261_vm8, %v230_v27, 75  ;;  %vm237_vm12 = vcmp.gt.s32.totalorder %v214_v31, 0  ;;  %v1164_v34 = vsel %vm259_vm9, %v228_v28, 75  ;;  %v236_v35 = vsel %vm235_vm10, %v213_v29, 0  ;;  %v218_v48 = vld [vmem:[%s1132_s27 + $0x58] sm:$0xff]  ;;  %v220_v49 = vld [vmem:[%s1132_s27 + $0x68] sm:$0xff] }
  0x20   : > { %v234_v36 = vsel %vm233_vm11, %v212_v30, 0  ;;  %v238_v37 = vsel %vm237_vm12, %v214_v31, 0  ;;  %vm267_vm13 = vcmp.lt.s32.totalorder %v236_v35, 75  ;;  %vm241_vm0 = vcmp.gt.s32.totalorder %v216_v38, 0  ;;  %v222_v56 = vld [vmem:[%s1132_s27 + $0x78] sm:$0xff]  ;;  %v221_v57 = vld [vmem:[%s1132_s27 + $0x70] sm:$0xff] }
  0x21   : > { %vm265_vm14 = vcmp.lt.s32.totalorder %v234_v36, 75  ;;  %vm269_vm15 = vcmp.lt.s32.totalorder %v238_v37, 75  ;;  %vm239_vm1 = vcmp.gt.s32.totalorder %v215_v39, 0  ;;  %v268_v41 = vsel %vm267_vm13, %v236_v35, 75 }
  0x22   : > { %v266_v42 = vsel %vm265_vm14, %v234_v36, 75  ;;  %vm243_vm2 = vcmp.gt.s32.totalorder %v217_v40, 0  ;;  %v270_v43 = vsel %vm269_vm15, %v238_v37, 75  ;;  %v242_v44 = vsel %vm241_vm0, %v216_v38, 0 }
  0x23   : > { %v240_v45 = vsel %vm239_vm1, %v215_v39, 0  ;;  %v244_v46 = vsel %vm243_vm2, %v217_v40, 0  ;;  %vm273_vm3 = vcmp.lt.s32.totalorder %v242_v44, 75  ;;  %vm247_vm6 = vcmp.gt.s32.totalorder %v219_v47, 0 }
  0x24   : > { %vm271_vm4 = vcmp.lt.s32.totalorder %v240_v45, 75  ;;  %vm275_vm5 = vcmp.lt.s32.totalorder %v244_v46, 75  ;;  %vm245_vm7 = vcmp.gt.s32.totalorder %v218_v48, 0  ;;  %v274_v50 = vsel %vm273_vm3, %v242_v44, 75 }
  0x25   : > { %319 = vrot.lane.b32.xlu2 %v295_v7, %s1046_s24  ;;  %317 = vrot.lane.b32.xlu1 %v294_v8, %s1046_s24  ;;  %v272_v51 = vsel %vm271_vm4, %v240_v45, 75  ;;  %vm249_vm8 = vcmp.gt.s32.totalorder %v220_v49, 0  ;;  %v276_v52 = vsel %vm275_vm5, %v244_v46, 75  ;;  %v248_v53 = vsel %vm247_vm6, %v219_v47, 0 }
  0x26   : > { %315 = vrot.lane.b32.xlu0 %v293_v9, %s1046_s24  ;;  %v246_v54 = vsel %vm245_vm7, %v218_v48, 0  ;;  %v250_v55 = vsel %vm249_vm8, %v220_v49, 0  ;;  %vm279_vm9 = vcmp.lt.s32.totalorder %v248_v53, 75  ;;  %vm253_vm12 = vcmp.gt.s32.totalorder %v222_v56, 0 }
  0x27   : > { %vm277_vm10 = vcmp.lt.s32.totalorder %v246_v54, 75  ;;  %vm281_vm11 = vcmp.lt.s32.totalorder %v250_v55, 75  ;;  %vm251_vm13 = vcmp.gt.s32.totalorder %v221_v57, 0  ;;  %v280_v58 = vsel %vm279_vm9, %v248_v53, 75 }
  0x28   : > { %v278_v59 = vsel %vm277_vm10, %v246_v54, 75  ;;  %v282_v60 = vsel %vm281_vm11, %v250_v55, 75  ;;  %v254_v61 = vsel %vm253_vm12, %v222_v56, 0  ;;  %v252_v62 = vsel %vm251_vm13, %v221_v57, 0 }
  0x29   : > { %vm285_vm14 = vcmp.lt.s32.totalorder %v254_v61, 75  ;;  %vm283_vm15 = vcmp.lt.s32.totalorder %v252_v62, 75  ;;  %v401_v63 = vadd.s32 1, %v1151_v24  ;;  %v402_v2 = vadd.s32 1, %v1149_v23 }
  0x2a   : > { %v286_v0 = vsel %vm285_vm14, %v254_v61, 75  ;;  %v284_v1 = vsel %vm283_vm15, %v252_v62, 75  ;;  %v403_v4 = vadd.s32 1, %v1164_v34  ;;  %v404_v5 = vadd.s32 1, %v1162_v33 }
  0x2b   : > { %v405_v7 = vadd.s32 1, %v1160_v32  ;;  %v406_v8 = vadd.s32 1, %v266_v42  ;;  %v407_v9 = vadd.s32 1, %v268_v41  ;;  %v410_v13 = vadd.s32 1, %v274_v50 }
  0x2c   : > { %v414_v21 = vadd.s32 1, %v282_v60  ;;  %v415_v22 = vadd.s32 1, %v284_v1  ;;  %v335_v45 = vlaneseq  ;;  %vm513_vm0 = vcmask 629760  }
  0x2d   : > { %325 = vrot.lane.b32.xlu2 %v298_v10, %s1046_s24  ;;  %323 = vrot.lane.b32.xlu1 %v297_v11, %s1046_s24  ;;  %v408_v11 = vadd.s32 1, %v270_v43  ;;  %vm530_vm3 = vcmask 7168  }
  0x2e   : > { %321 = vrot.lane.b32.xlu0 %v296_v12, %s1046_s24  ;;  %v409_v12 = vadd.s32 1, %v272_v51  ;;  %v1229_v46 = vand.u32 127, %v335_v45 }
  0x35   : > { %331 = vrot.lane.b32.xlu2 %v301_v15, %s1046_s24  ;;  %329 = vrot.lane.b32.xlu1 %v300_v16, %s1046_s24  ;;  %v411_v15 = vadd.s32 1, %v276_v52  ;;  %v412_v16 = vadd.s32 1, %v278_v59 }
  0x36   : > { %327 = vrot.lane.b32.xlu0 %v299_v17, %s1046_s24  ;;  %v413_v17 = vadd.s32 1, %v280_v58 }
  0x3d   : > { %341 = vperm.xlu2 %956, %v1149_v23   ;;  %338 = vperm.xlu1 %955, %v1151_v24   ;;  %v416_v23 = vadd.s32 1, %v286_v0 }
  0x3e   : > { %333 = vrot.lane.b32.xlu0 %v302_v25, %s1046_s24 }
  0x45   : > { %350 = vperm.xlu2 %956, %v1160_v32   ;;  %347 = vperm.xlu1 %955, %v1162_v33  }
  0x46   : > { %344 = vperm.xlu0 %957, %v1164_v34  }
  0x4d   : > { %356 = vperm.xlu2 %956, %v268_v41   ;;  %353 = vperm.xlu1 %955, %v266_v42  }
  0x4e   : > { %359 = vperm.xlu0 %957, %v270_v43  }
  0x55   : > { %365 = vperm.xlu2 %956, %v274_v50   ;;  %362 = vperm.xlu1 %955, %v272_v51  }
  0x56   : > { %368 = vperm.xlu0 %957, %v276_v52   ;;  %v1048_v52 = vmov 101  }
  0x5d   : > { %374 = vperm.xlu2 %956, %v280_v58   ;;  %371 = vperm.xlu1 %955, %v278_v59  }
  0x5e   : > { %377 = vperm.xlu0 %957, %v282_v60  }
  0x65   : > { %383 = vperm.xlu2 %956, %v286_v0   ;;  %380 = vperm.xlu1 %955, %v284_v1  }
  0x66   : > { %418 = vperm.xlu0 %957, %v401_v63  }
  0x6d   : > { %424 = vperm.xlu2 %956, %v403_v4   ;;  %421 = vperm.xlu1 %955, %v402_v2  }
  0x6e   : > { %427 = vperm.xlu0 %957, %v404_v5  }
  0x6f   : > { %v1181_v6 = vpop.permute.xlu2 %311 }
  0x75   : > { %433 = vperm.xlu2 %956, %v406_v8   ;;  %430 = vperm.xlu1 %955, %v405_v7  }
  0x76   : > { %436 = vperm.xlu0 %957, %v407_v9  }
  0x77   : > { %v1184_v10 = vpop.permute.xlu2 %313 }
  0x7d   : > { %442 = vperm.xlu2 %956, %v409_v12   ;;  %439 = vperm.xlu1 %955, %v408_v11  }
  0x7e   : > { %445 = vperm.xlu0 %957, %v410_v13  }
  0x7f   : > { %v1186_v14 = vpop.permute.xlu2 %319 }
  0x85   : > { %451 = vperm.xlu2 %956, %v412_v16   ;;  %448 = vperm.xlu1 %955, %v411_v15  }
  0x86   : > { %454 = vperm.xlu0 %957, %v413_v17  }
  0x87   : > { %v1188_v18 = vpop.permute.xlu2 %325  ;;  %v308_v19 = vpop.permute.xlu1 %307 }
  0x88   : > { %v1190_v20 = vpop.permute.xlu0 %303 }
  0x8d   : > { %460 = vperm.xlu2 %956, %v415_v22   ;;  %457 = vperm.xlu1 %955, %v414_v21  }
  0x8e   : > { %463 = vperm.xlu0 %957, %v416_v23  }
  0x8f   : > { %v1192_v24 = vpop.permute.xlu2 %331  ;;  %v1194_v25 = vpop.permute.xlu1 %309 }
  0x90   : > { %v1196_v26 = vpop.permute.xlu0 %305 }
  0x97   : > { %v1198_v27 = vpop.permute.xlu1 %317  ;;  %v1200_v28 = vpop.permute.xlu2 %341 }
  0x98   : > { %v1202_v29 = vpop.permute.xlu0 %315  ;;  %vm386_vm10 = vcmp.le.s32.totalorder %v1229_v46, %v1200_v28 }
  0x9f   : > { %v1204_v30 = vpop.permute.xlu1 %323  ;;  %v1206_v31 = vpop.permute.xlu2 %350 }
  0xa0   : > { %v1208_v32 = vpop.permute.xlu0 %321 }
  0xa7   : > { %v1210_v33 = vpop.permute.xlu1 %329  ;;  %v1212_v34 = vpop.permute.xlu2 %356 }
  0xa8   : > { %v1214_v35 = vpop.permute.xlu0 %327 }
  0xaf   : > { %v1216_v36 = vpop.permute.xlu2 %365  ;;  %v339_v37 = vpop.permute.xlu1 %338 }
  0xb0   : > { %v1218_v38 = vpop.permute.xlu0 %333  ;;  %vm385_vm9 = vcmp.le.s32.totalorder %v1229_v46, %v339_v37 }
  0xb7   : > { %v1220_v39 = vpop.permute.xlu2 %374  ;;  %v1222_v40 = vpop.permute.xlu1 %347 }
  0xb8   : > { %v345_v41 = vpop.permute.xlu0 %344  ;;  %vm388_vm15 = vcmp.le.s32.totalorder %v1229_v46, %v1222_v40 }
  0xb9   : > { %vm387_vm2 = vcmp.le.s32.totalorder %v1229_v46, %v345_v41 }
  0xbf   : > { %v1224_v42 = vpop.permute.xlu2 %383  ;;  %v354_v43 = vpop.permute.xlu1 %353 }
  0xc0   : > { %v1226_v44 = vpop.permute.xlu0 %359  ;;  %vm390_vm5 = vcmp.le.s32.totalorder %v1229_v46, %v354_v43 }
  0xc7   : > { %v425_v47 = vpop.permute.xlu2 %424  ;;  %v363_v48 = vpop.permute.xlu1 %362 }
  0xc8   : > { %v1231_v49 = vpop.permute.xlu0 %368  ;;  %vm467_vm1 = vcmp.eq.s32.totalorder %v1229_v46, %v425_v47  ;;  %vm393_vm7 = vcmp.le.s32.totalorder %v1229_v46, %v363_v48 }
  0xc9   : > { %v483_v50 = vsel %vm467_vm1, 102, %v1047_v3  ;;  %vm389_vm1 = vcmp.le.s32.totalorder %v1229_v46, %v1206_v31 }
  0xca   : > { %v499_v51 = vsel %vm387_vm2, %v308_v19, %v483_v50 }
  0xcb   : > { %516 = vst.msk [vmem:[%s1236_s30 + $0x10] sm:$0xff] %vm513_vm0, %v499_v51 }
  0xcc   : > { %533 = vst.msk [vmem:[%s1236_s30 + $0x10] sm:$0xff] %vm530_vm3, %v1048_v52 }
  0xcf   : > { %v434_v53 = vpop.permute.xlu2 %433  ;;  %v372_v54 = vpop.permute.xlu1 %371 }
  0xd0   : > { %v1243_v55 = vpop.permute.xlu0 %377  ;;  %vm470_vm4 = vcmp.eq.s32.totalorder %v1229_v46, %v434_v53  ;;  %vm396_vm13 = vcmp.le.s32.totalorder %v1229_v46, %v372_v54 }
  0xd1   : > { %v486_v56 = vsel %vm470_vm4, 102, %v1047_v3 }
  0xd2   : > { %v502_v57 = vsel %vm390_vm5, %v1184_v10, %v486_v56 }
  0xd3   : > { %519 = vst.msk [vmem:[%s1236_s30 + $0x28] sm:$0xff] %vm513_vm0, %v502_v57 }
  0xd4   : > { %536 = vst.msk [vmem:[%s1236_s30 + $0x28] sm:$0xff] %vm530_vm3, %v1048_v52 }
  0xd7   : > { %v443_v58 = vpop.permute.xlu2 %442  ;;  %v381_v59 = vpop.permute.xlu1 %380 }
  0xd8   : > { %vm473_vm6 = vcmp.eq.s32.totalorder %v1229_v46, %v443_v58  ;;  %v419_v60 = vpop.permute.xlu0 %418  ;;  %vm399_vm5 = vcmp.le.s32.totalorder %v1229_v46, %v381_v59 }
  0xd9   : > { %v489_v61 = vsel %vm473_vm6, 102, %v1047_v3  ;;  %vm465_vm8 = vcmp.eq.s32.totalorder %v1229_v46, %v419_v60 }
  0xda   : > { %v505_v62 = vsel %vm393_vm7, %v1186_v14, %v489_v61  ;;  %v481_v63 = vsel %vm465_vm8, 102, %v1047_v3  ;;  %vm391_vm7 = vcmp.le.s32.totalorder %v1229_v46, %v1212_v34 }
  0xdb   : > { %522 = vst.msk [vmem:[%s1236_s30 + $0x40] sm:$0xff] %vm513_vm0, %v505_v62  ;;  %v497_v0 = vsel %vm385_vm9, %v1190_v20, %v481_v63  ;;  %vm392_vm9 = vcmp.le.s32.totalorder %v1229_v46, %v1226_v44 }
  0xdc   : > { %539 = vst.msk [vmem:[%s1236_s30 + $0x40] sm:$0xff] %vm530_vm3, %v1048_v52 }
  0xdd   : > { %514 = vst.msk [vmem:[%s1236_s30] sm:$0xff] %vm513_vm0, %v497_v0 }
  0xde   : > { %531 = vst.msk [vmem:[%s1236_s30] sm:$0xff] %vm530_vm3, %v1048_v52 }
  0xdf   : > { %v452_v1 = vpop.permute.xlu2 %451  ;;  %v422_v2 = vpop.permute.xlu1 %421 }
  0xe0   : > { %vm476_vm11 = vcmp.eq.s32.totalorder %v1229_v46, %v452_v1  ;;  %vm466_vm12 = vcmp.eq.s32.totalorder %v1229_v46, %v422_v2  ;;  %v428_v4 = vpop.permute.xlu0 %427 }
  0xe1   : > { %v492_v5 = vsel %vm476_vm11, 102, %v1047_v3  ;;  %v482_v7 = vsel %vm466_vm12, 102, %v1047_v3  ;;  %vm468_vm14 = vcmp.eq.s32.totalorder %v1229_v46, %v428_v4  ;;  %vm394_vm11 = vcmp.le.s32.totalorder %v1229_v46, %v1216_v36 }
  0xe2   : > { %v508_v8 = vsel %vm396_vm13, %v1188_v18, %v492_v5  ;;  %v498_v9 = vsel %vm386_vm10, %v1196_v26, %v482_v7  ;;  %v484_v10 = vsel %vm468_vm14, 102, %v1047_v3  ;;  %vm395_vm13 = vcmp.le.s32.totalorder %v1229_v46, %v1231_v49 }
  0xe3   : > { %525 = vst.msk [vmem:[%s1236_s30 + $0x58] sm:$0xff] %vm513_vm0, %v508_v8  ;;  %v500_v11 = vsel %vm388_vm15, %v1194_v25, %v484_v10  ;;  %vm397_vm15 = vcmp.le.s32.totalorder %v1229_v46, %v1220_v39 }
  0xe4   : > { %542 = vst.msk [vmem:[%s1236_s30 + $0x58] sm:$0xff] %vm530_vm3, %v1048_v52 }
  0xe5   : > { %515 = vst.msk [vmem:[%s1236_s30 + $0x8] sm:$0xff] %vm513_vm0, %v498_v9 }
  0xe6   : > { %532 = vst.msk [vmem:[%s1236_s30 + $0x8] sm:$0xff] %vm530_vm3, %v1048_v52 }
  0xe7   : > { %517 = vst.msk [vmem:[%s1236_s30 + $0x18] sm:$0xff] %vm513_vm0, %v500_v11  ;;  %v461_v12 = vpop.permute.xlu2 %460  ;;  %v431_v13 = vpop.permute.xlu1 %430 }
  0xe8   : > { %534 = vst.msk [vmem:[%s1236_s30 + $0x18] sm:$0xff] %vm530_vm3, %v1048_v52  ;;  %vm479_vm2 = vcmp.eq.s32.totalorder %v1229_v46, %v461_v12  ;;  %vm469_vm4 = vcmp.eq.s32.totalorder %v1229_v46, %v431_v13  ;;  %v437_v14 = vpop.permute.xlu0 %436 }
  0xe9   : > { %v495_v15 = vsel %vm479_vm2, 102, %v1047_v3  ;;  %v485_v16 = vsel %vm469_vm4, 102, %v1047_v3  ;;  %vm471_vm6 = vcmp.eq.s32.totalorder %v1229_v46, %v437_v14  ;;  %vm398_vm2 = vcmp.le.s32.totalorder %v1229_v46, %v1243_v55 }
  0xea   : > { %v511_v17 = vsel %vm399_vm5, %v1192_v24, %v495_v15  ;;  %v501_v18 = vsel %vm389_vm1, %v1181_v6, %v485_v16  ;;  %v487_v19 = vsel %vm471_vm6, 102, %v1047_v3  ;;  %vm400_vm5 = vcmp.le.s32.totalorder %v1229_v46, %v1224_v42 }
  0xeb   : > { %528 = vst.msk [vmem:[%s1236_s30 + $0x70] sm:$0xff] %vm513_vm0, %v511_v17  ;;  %v503_v20 = vsel %vm391_vm7, %v1202_v29, %v487_v19 }
  0xec   : > { %545 = vst.msk [vmem:[%s1236_s30 + $0x70] sm:$0xff] %vm530_vm3, %v1048_v52 }
  0xed   : > { %518 = vst.msk [vmem:[%s1236_s30 + $0x20] sm:$0xff] %vm513_vm0, %v501_v18 }
  0xee   : > { %535 = vst.msk [vmem:[%s1236_s30 + $0x20] sm:$0xff] %vm530_vm3, %v1048_v52 }
  0xef   : > { %520 = vst.msk [vmem:[%s1236_s30 + $0x30] sm:$0xff] %vm513_vm0, %v503_v20  ;;  %v440_v6 = vpop.permute.xlu1 %439 }
  0xf0   : > { %537 = vst.msk [vmem:[%s1236_s30 + $0x30] sm:$0xff] %vm530_vm3, %v1048_v52  ;;  %vm472_vm8 = vcmp.eq.s32.totalorder %v1229_v46, %v440_v6  ;;  %v446_v21 = vpop.permute.xlu0 %445 }
  0xf1   : > { %v488_v22 = vsel %vm472_vm8, 102, %v1047_v3  ;;  %vm474_vm10 = vcmp.eq.s32.totalorder %v1229_v46, %v446_v21 }
  0xf2   : > { %v504_v23 = vsel %vm392_vm9, %v1198_v27, %v488_v22  ;;  %v490_v24 = vsel %vm474_vm10, 102, %v1047_v3 }
  0xf3   : > { %521 = vst.msk [vmem:[%s1236_s30 + $0x38] sm:$0xff] %vm513_vm0, %v504_v23  ;;  %v506_v25 = vsel %vm394_vm11, %v1208_v32, %v490_v24 }
  0xf4   : > { %538 = vst.msk [vmem:[%s1236_s30 + $0x38] sm:$0xff] %vm530_vm3, %v1048_v52 }
  0xf5   : > { %523 = vst.msk [vmem:[%s1236_s30 + $0x48] sm:$0xff] %vm513_vm0, %v506_v25 }
  0xf6   : > { %540 = vst.msk [vmem:[%s1236_s30 + $0x48] sm:$0xff] %vm530_vm3, %v1048_v52 }
  0xf7   : > { %v449_v26 = vpop.permute.xlu1 %448 }
  0xf8   : > { %vm475_vm12 = vcmp.eq.s32.totalorder %v1229_v46, %v449_v26  ;;  %v455_v27 = vpop.permute.xlu0 %454 }
  0xf9   : > { %v491_v28 = vsel %vm475_vm12, 102, %v1047_v3  ;;  %vm477_vm14 = vcmp.eq.s32.totalorder %v1229_v46, %v455_v27 }
  0xfa   : > { %v507_v29 = vsel %vm395_vm13, %v1204_v30, %v491_v28  ;;  %v493_v31 = vsel %vm477_vm14, 102, %v1047_v3 }
  0xfb   : > { %524 = vst.msk [vmem:[%s1236_s30 + $0x50] sm:$0xff] %vm513_vm0, %v507_v29  ;;  %v509_v32 = vsel %vm397_vm15, %v1214_v35, %v493_v31 }
  0xfc   : > { %541 = vst.msk [vmem:[%s1236_s30 + $0x50] sm:$0xff] %vm530_vm3, %v1048_v52 }
  0xfd   : > { %526 = vst.msk [vmem:[%s1236_s30 + $0x60] sm:$0xff] %vm513_vm0, %v509_v32 }
  0xfe   : > { %543 = vst.msk [vmem:[%s1236_s30 + $0x60] sm:$0xff] %vm530_vm3, %v1048_v52 }
  0xff   : > { %v458_v34 = vpop.permute.xlu1 %457 }
 0x100   : > { %vm478_vm1 = vcmp.eq.s32.totalorder %v1229_v46, %v458_v34  ;;  %v464_v30 = vpop.permute.xlu0 %463 }
 0x101   : > { %v494_v36 = vsel %vm478_vm1, 102, %v1047_v3  ;;  %vm480_vm4 = vcmp.eq.s32.totalorder %v1229_v46, %v464_v30 }
 0x102   : > { %v510_v35 = vsel %vm398_vm2, %v1210_v33, %v494_v36  ;;  %v496_v37 = vsel %vm480_vm4, 102, %v1047_v3  ;;  %553 = sbr.rel (!%p1089_p4) target bundleno = 311 (0x137), region = 32 }
 0x103   : > { %527 = vst.msk [vmem:[%s1236_s30 + $0x68] sm:$0xff] %vm513_vm0, %v510_v35  ;;  %v512_v39 = vsel %vm400_vm5, %v1218_v38, %v496_v37 }
 0x104   : > { %544 = vst.msk [vmem:[%s1236_s30 + $0x68] sm:$0xff] %vm530_vm3, %v1048_v52 }
 0x105   : > { %529 = vst.msk [vmem:[%s1236_s30 + $0x78] sm:$0xff] %vm513_vm0, %v512_v39 }
 0x106   : > { %546 = vst.msk [vmem:[%s1236_s30 + $0x78] sm:$0xff] %vm530_vm3, %v1048_v52 }
 0x107   : > { %s1507_s3 = smov (!%p556_p8, %s555_s3), 16 }
 0x108   : > { %s846_s8 = sshll.u32 %s1507_s3, 3 }
 0x109   : > { %p849_p9 = scmp.eq.s32.totalorder %s846_s8, 0 }
 0x10a   : > { %s1403_s9 = sshrl.u32 (!%p849_p9), %s1507_s3, 4 }
 0x10b   : > { %564 = sbr.rel (%p849_p9) target bundleno = 311 (0x137), region = 36  ;;  %p850_p10 = scmp.le.s32.totalorder (!%p849_p9), %s1403_s9, 0 }
 0x110   : > { %785 = sbr.rel (%p850_p10) target bundleno = 294 (0x126), region = 115  ;;  %s1498_s11 = smov (!%p850_p10), %s1397_s7 }
 0x111   : > { %s1499_s12 = smov (!%p850_p10), %s1236_s30  ;;  %s1412_s14 = smov (!%p850_p10), 0  }
 0x112   : > { %s1414_s15 = smov (!%p850_p10), 0  }
 0x115 LB: >> { %v657_v3 = vld [vmem:[%s1020_s12] sm:$0xff]  ;;  %v659_v33 = vld [vmem:[%s1020_s12 + $0x8] sm:$0xff]  ;;  %v661_v38 = vld [vmem:[%s1020_s12 + $0x10] sm:$0xff]  ;;  %s689_s17 = sadd.s32 1, %s1024_s14  ;;  %s651_s15 = sadd.s32 1, %s1028_s15   ;;  %s1028_s15 = sphi %s1414_s15, %s651_s15   ;;  %s1024_s14 = sphi %s1412_s14, %s1502_s14   ;;  %s1020_s12 = sphi %s1499_s12, %s1501_s12   ;;  %s1016_s11 = sphi %s1498_s11, %s1500_s11  }
 0x116   : >> { %658 = vst [vmem:[%s1016_s11] sm:$0xff] %v657_v3  ;;  %v663_v40 = vld [vmem:[%s1020_s12 + $0x18] sm:$0xff]  ;;  %p690_p11 = scmp.ge.s32.totalorder %s689_s17, %s1403_s9  ;;  %v665_v41 = vld [vmem:[%s1020_s12 + $0x20] sm:$0xff]  ;;  %v667_v42 = vld [vmem:[%s1020_s12 + $0x28] sm:$0xff]  ;;  %p650_p12 = scmp.ge.s32.totalorder %s651_s15, %s1403_s9 }
 0x117   : >> { %660 = vst [vmem:[%s1016_s11 + $0x8] sm:$0xff] %v659_v33  ;;  %v669_v43 = vld [vmem:[%s1020_s12 + $0x30] sm:$0xff]  ;;  %v671_v44 = vld [vmem:[%s1020_s12 + $0x38] sm:$0xff]  ;;  %v673_v45 = vld [vmem:[%s1020_s12 + $0x40] sm:$0xff] }
 0x118   : >> { %662 = vst [vmem:[%s1016_s11 + $0x10] sm:$0xff] %v661_v38  ;;  %s1509_s17 = smov (%p690_p11, %s689_s17), 0  ;;  %v675_v46 = vld [vmem:[%s1020_s12 + $0x48] sm:$0xff]  ;;  %v677_v47 = vld [vmem:[%s1020_s12 + $0x50] sm:$0xff]  ;;  %v679_v48 = vld [vmem:[%s1020_s12 + $0x58] sm:$0xff] }
 0x119   : >> { %664 = vst [vmem:[%s1016_s11 + $0x18] sm:$0xff] %v663_v40  ;;  %s851_s18 = sshll.u32 %s1509_s17, 7  ;;  %v681_v49 = vld [vmem:[%s1020_s12 + $0x60] sm:$0xff]  ;;  %v683_v50 = vld [vmem:[%s1020_s12 + $0x68] sm:$0xff]  ;;  %v685_v51 = vld [vmem:[%s1020_s12 + $0x70] sm:$0xff]  ;;  %s1502_s14 = smov %s1509_s17 }
 0x11a   : >> { %666 = vst [vmem:[%s1016_s11 + $0x20] sm:$0xff] %v665_v41  ;;  %s694_s19 = scalar_lea.vmem %s1236_s30, %s851_s18 [#allocation2]   ;;  %s695_s20 = scalar_lea.vmem %s1397_s7, %s851_s18   ;;  %v687_v52 = vld [vmem:[%s1020_s12 + $0x78] sm:$0xff] }
 0x11b   : >> { %668 = vst [vmem:[%s1016_s11 + $0x28] sm:$0xff] %v667_v42  ;;  %s1501_s12 = smov %s694_s19 }
 0x11c   : >> { %670 = vst [vmem:[%s1016_s11 + $0x30] sm:$0xff] %v669_v43 }
 0x11d   : >> { %672 = vst [vmem:[%s1016_s11 + $0x38] sm:$0xff] %v671_v44 }
 0x11e   : >> { %674 = vst [vmem:[%s1016_s11 + $0x40] sm:$0xff] %v673_v45 }
 0x11f   : >> { %676 = vst [vmem:[%s1016_s11 + $0x48] sm:$0xff] %v675_v46 }
 0x120   : >> { %678 = vst [vmem:[%s1016_s11 + $0x50] sm:$0xff] %v677_v47 }
 0x121   : >> { %680 = vst [vmem:[%s1016_s11 + $0x58] sm:$0xff] %v679_v48  ;;  %653 = sbr.rel (!%p650_p12) target bundleno = 277 (0x115), region = 121 }
 0x122   : >> { %682 = vst [vmem:[%s1016_s11 + $0x60] sm:$0xff] %v681_v49 }
 0x123   : >> { %684 = vst [vmem:[%s1016_s11 + $0x68] sm:$0xff] %v683_v50 }
 0x124   : >> { %686 = vst [vmem:[%s1016_s11 + $0x70] sm:$0xff] %v685_v51 }
 0x125   : >> { %688 = vst [vmem:[%s1016_s11 + $0x78] sm:$0xff] %v687_v52  ;;  %s1500_s11 = smov %s695_s20 }
 0x126 PF: > { %s1476_s21 = sand.u32 15, %s1507_s3   ;;  %s862_s22 = sshll.u32 %s1403_s9, 7 }
 0x127   : > { %s700_s23 = scalar_lea.vmem %s1236_s30, %s862_s22 [#allocation2]   ;;  %s702_s24 = scalar_lea.vmem %s1397_s7, %s862_s22  }
 0x128   : > { %p856_p13 = scmp.le.s32.totalorder %s1476_s21, 0 }
 0x129   : > { %s1030_s25 = smov (!%p856_p13), %s702_s24   ;;  %s1034_s26 = smov (!%p856_p13), %s700_s23  }
 0x12a   : > { %799 = sbr.rel (%p856_p13) target bundleno = 311 (0x137), region = 126  ;;  %s1038_s27 = smov (!%p856_p13), 0  }
 0x12b   : > { %s1042_s28 = smov (!%p856_p13), 0  }
 0x12f LB: >> { %v712_v53 = vld [vmem:[%s1036_s26] sm:$0xff]  ;;  %s714_s29 = sadd.s32 1, %s1040_s27  ;;  %s706_s28 = sadd.s32 1, %s1044_s28   ;;  %s1044_s28 = sphi %s1042_s28, %s706_s28   ;;  %s1040_s27 = sphi %s1038_s27, %s1039_s27   ;;  %s1036_s26 = sphi %s1034_s26, %s719_s26   ;;  %s1032_s25 = sphi %s1030_s25, %s720_s25  }
 0x130   : >> { %713 = vst [vmem:[%s1032_s25] sm:$0xff] %v712_v53  ;;  %p715_p0 = scmp.ge.s32.totalorder %s714_s29, %s1476_s21  ;;  %p705_p1 = scmp.ge.s32.totalorder %s706_s28, %s1476_s21 }
 0x132   : >> { %s1511_s29 = smov (%p715_p0, %s714_s29), 0  ;;  %708 = sbr.rel (!%p705_p1) target bundleno = 303 (0x12f), region = 132 }
 0x133   : >> { %s857_s30 = sshll.u32 %s1511_s29, 3  ;;  %s1039_s27 = smov %s1511_s29  }
 0x134   : >> { %s719_s26 = scalar_lea.vmem %s700_s23, %s857_s30 [#allocation2]   ;;  %s720_s25 = scalar_lea.vmem %s702_s24, %s857_s30  }
 0x137 PF: > { %p9_p2 = scmp.ge.s32.totalorder %s1079_s13, 4   ;;  %s1503_s9 = smov %s1008_s10 }
 0x138   : > { %s1504_s10 = smov %s1087_s16  ;;  %s1505_s11 = smov %s1079_s13 }
 0x139   :  { %11 = sbr.rel (!%p9_p2) target bundleno = 2 (0x2), region = 143 }

</bundles_post_ra>
